<compile_context>
chip_gen: v5e
topology: v5e:2x2
jax: 0.10.0
libtpu: 0.0.40
codegen_flags: <defaults>
</compile_context>

<pallas_src>
import jax
import jax.numpy as jnp
from jax.experimental import pallas as pl
from jax.experimental.pallas import tpu as pltpu


def critic_kernel(x_ref, u_ref, w1x_ref, w1u_ref, b1_ref,
                  w2_ref, b2_ref, w3_ref, b3_ref, o_ref):
    # Layer 1: fused "concat" matmul — x@w1x + u@w1u + b1 (bf16 MXU, f32 acc).
    xb = x_ref[...].astype(jnp.bfloat16)
    ub = u_ref[...].astype(jnp.bfloat16)
    h = (jnp.dot(xb, w1x_ref[...], preferred_element_type=jnp.float32)
         + jnp.dot(ub, w1u_ref[...], preferred_element_type=jnp.float32)
         + b1_ref[...])
    h = jnp.maximum(h, 0.0)                                   # ReLU (f32, VPU)

    # Layer 2: bf16 MXU matmul, f32 accumulation, f32 bias + ReLU.
    h = jnp.dot(h.astype(jnp.bfloat16), w2_ref[...],
                preferred_element_type=jnp.float32) + b2_ref[...]
    h = jnp.maximum(h, 0.0)

    # Layer 3 (out_features = 1): VPU multiply + cross-lane reduce instead of
    # an N=1 MXU matmul (1/128 lane utilization).  w3_ref is (1, h2).
    q = jnp.sum(h * w3_ref[...], axis=-1, keepdims=True) + b3_ref[...]
    o_ref[...] = q.astype(o_ref.dtype)                        # (TILE_B, 1)


def critic_forward(x, u, params, *, tile_b=256):
    """x: (B, state_dim), u: (B, action_dim) -> q: (B, 1) float32."""
    w1x, w1u, b1, w2, b2, w3_row, b3 = params
    B, state_dim = x.shape
    action_dim = u.shape[1]
    h1 = w1x.shape[1]
    h2 = w2.shape[1]

    # Small batches: single grid step over the whole batch.  Large batches:
    # tile over batch (pad to a multiple of tile_b), weights stay resident.
    if B <= tile_b:
        tb, b_padded = B, B
    else:
        tb = tile_b
        b_padded = ((B + tb - 1) // tb) * tb
        pad = b_padded - B
        if pad:
            x = jnp.pad(x, ((0, pad), (0, 0)))
            u = jnp.pad(u, ((0, pad), (0, 0)))
    nb = b_padded // tb

    const2d = lambda i: (0, 0)  # weights / biases: same VMEM block every step

    q = pl.pallas_call(
        critic_kernel,
        out_shape=jax.ShapeDtypeStruct((b_padded, 1), jnp.float32),
        grid=(nb,),
        in_specs=[
            pl.BlockSpec((tb, state_dim), lambda i: (i, 0)),
            pl.BlockSpec((tb, action_dim), lambda i: (i, 0)),
            pl.BlockSpec(w1x.shape, const2d),
            pl.BlockSpec(w1u.shape, const2d),
            pl.BlockSpec(b1.shape, const2d),
            pl.BlockSpec(w2.shape, const2d),
            pl.BlockSpec(b2.shape, const2d),
            pl.BlockSpec(w3_row.shape, const2d),
            pl.BlockSpec(b3.shape, const2d),
        ],
        out_specs=pl.BlockSpec((tb, 1), lambda i: (i, 0)),
        compiler_params=pltpu.CompilerParams(
            dimension_semantics=("parallel",)),
    )(x, u, w1x, w1u, b1, w2, b2, w3_row, b3)

    return q[:B]


def init_critic_params(key, state_dim, action_dim, h1, h2):
    """Mimics nn.Linear's U(-1/sqrt(fan_in), 1/sqrt(fan_in)) init.

    Returns (w1x, w1u, b1, w2, b2, w3_row, b3) with matmul weights stored
    pre-transposed [in, out] in bf16 (MXU operands) and biases / the final
    reduction weight row in f32."""
    in_size = state_dim + action_dim
    keys = jax.random.split(key, 6)

    def linear(kw, kb, fan_in, fan_out):
        bound = 1.0 / jnp.sqrt(float(fan_in))
        w = jax.random.uniform(kw, (fan_in, fan_out), jnp.float32, -bound, bound)
        b = jax.random.uniform(kb, (1, fan_out), jnp.float32, -bound, bound)
        return w, b

    w1, b1 = linear(keys[0], keys[1], in_size, h1)
    w2, b2 = linear(keys[2], keys[3], h1, h2)
    w3, b3 = linear(keys[4], keys[5], h2, 1)

    w1x = w1[:state_dim].astype(jnp.bfloat16)   # (state_dim, h1)
    w1u = w1[state_dim:].astype(jnp.bfloat16)   # (action_dim, h1)
    w2b = w2.astype(jnp.bfloat16)               # (h1, h2)
    w3_row = w3.T                                # (1, h2), f32 (VPU reduction)
    return (w1x, w1u, b1, w2b, b2, w3_row, b3)


if __name__ == "__main__":
    key = jax.random.PRNGKey(0)
    k_x, k_u, k_p = jax.random.split(key, 3)

    batch = 8
    state_dim = 16
    action_dim = 8
    h1, h2 = 32, 32

    x = jax.random.normal(k_x, (batch, state_dim), jnp.float32)
    u = jax.random.normal(k_u, (batch, action_dim), jnp.float32)
    params = init_critic_params(k_p, state_dim, action_dim, h1, h2)

    q = critic_forward(x, u, params)
    q = jax.block_until_ready(q)

    # Reference 1: emulate the same bf16-MXU / f32-acc math in plain JAX.
    w1x, w1u, b1, w2, b2, w3_row, b3 = params
    xb, ub = x.astype(jnp.bfloat16), u.astype(jnp.bfloat16)
    h = (jnp.dot(xb, w1x, preferred_element_type=jnp.float32)
         + jnp.dot(ub, w1u, preferred_element_type=jnp.float32) + b1)
    h = jnp.maximum(h, 0.0)
    h = jnp.dot(h.astype(jnp.bfloat16), w2,
                preferred_element_type=jnp.float32) + b2
    h = jnp.maximum(h, 0.0)
    ref_bf16 = jnp.sum(h * w3_row, axis=-1, keepdims=True) + b3

    # Reference 2: full-f32 module semantics (loose tolerance for the bf16 cast).
    xu = jnp.concatenate([x, u], axis=1)
    w1_f32 = jnp.concatenate(
        [w1x.astype(jnp.float32), w1u.astype(jnp.float32)], axis=0)
    ref_f32 = jnp.maximum(xu @ w1_f32 + b1, 0.0)
    ref_f32 = jnp.maximum(ref_f32 @ w2.astype(jnp.float32) + b2, 0.0)
    ref_f32 = ref_f32 @ w3_row.T + b3

    assert q.shape == (batch, 1)
    assert jnp.allclose(q, ref_bf16, atol=1e-4, rtol=1e-4)
    assert jnp.allclose(q, ref_f32, atol=5e-2, rtol=5e-2)
    print("KERNEL_OK")
</pallas_src>

<mosaic_0001>
module attributes {stable_mosaic.version = 11 : i64} {
  func.func @critic_kernel(%arg0: i32, %arg1: memref<8x16xf32, #tpu.memory_space<vmem>>, %arg2: memref<8x8xf32, #tpu.memory_space<vmem>>, %arg3: memref<16x32xbf16, #tpu.memory_space<vmem>>, %arg4: memref<8x32xbf16, #tpu.memory_space<vmem>>, %arg5: memref<1x32xf32, #tpu.memory_space<vmem>>, %arg6: memref<32x32xbf16, #tpu.memory_space<vmem>>, %arg7: memref<1x32xf32, #tpu.memory_space<vmem>>, %arg8: memref<1x32xf32, #tpu.memory_space<vmem>>, %arg9: memref<1x1xf32, #tpu.memory_space<vmem>>, %arg10: memref<8x1xf32, #tpu.memory_space<vmem>>) attributes {dimension_semantics = [#tpu.dimension_semantics<parallel>], iteration_bounds = array<i64: 1>, scalar_prefetch = 0 : i64, scratch_operands = 0 : i64, tpu.core_type = #tpu.core_type<tc>, window_params = [{transform_indices = @transform_0, window_bounds = array<i64: 8, 16>}, {transform_indices = @transform_1, window_bounds = array<i64: 8, 8>}, {pipeline_mode = #tpu.pipeline_mode<synchronous>, transform_indices = @transform_2, window_bounds = array<i64: 16, 32>}, {pipeline_mode = #tpu.pipeline_mode<synchronous>, transform_indices = @transform_3, window_bounds = array<i64: 8, 32>}, {pipeline_mode = #tpu.pipeline_mode<synchronous>, transform_indices = @transform_4, window_bounds = array<i64: 1, 32>}, {pipeline_mode = #tpu.pipeline_mode<synchronous>, transform_indices = @transform_5, window_bounds = array<i64: 32, 32>}, {pipeline_mode = #tpu.pipeline_mode<synchronous>, transform_indices = @transform_6, window_bounds = array<i64: 1, 32>}, {pipeline_mode = #tpu.pipeline_mode<synchronous>, transform_indices = @transform_7, window_bounds = array<i64: 1, 32>}, {pipeline_mode = #tpu.pipeline_mode<synchronous>, transform_indices = @transform_8, window_bounds = array<i64: 1, 1>}, {transform_indices = @transform_9, window_bounds = array<i64: 8, 1>}]} {
    %c0 = arith.constant 0 : index
    %c0_0 = arith.constant 0 : index
    %0 = vector.load %arg1[%c0, %c0_0] : memref<8x16xf32, #tpu.memory_space<vmem>>, vector<8x16xf32>
    %1 = arith.truncf %0 : vector<8x16xf32> to vector<8x16xbf16>
    %c0_1 = arith.constant 0 : index
    %c0_2 = arith.constant 0 : index
    %2 = vector.load %arg2[%c0_1, %c0_2] : memref<8x8xf32, #tpu.memory_space<vmem>>, vector<8x8xf32>
    %3 = arith.truncf %2 : vector<8x8xf32> to vector<8x8xbf16>
    %c0_3 = arith.constant 0 : index
    %c0_4 = arith.constant 0 : index
    %4 = vector.load %arg3[%c0_3, %c0_4] : memref<16x32xbf16, #tpu.memory_space<vmem>>, vector<16x32xbf16>
    %cst = arith.constant dense<0.000000e+00> : vector<8x32xf32>
    %5 = tpu.matmul %1, %4, %cst {dimension_numbers = #tpu.dot_dimension_numbers<[1], [0], [0], [1], [0, 0, 1, 1], [], []>} : vector<8x16xbf16>, vector<16x32xbf16>, vector<8x32xf32> -> vector<8x32xf32>
    %c0_5 = arith.constant 0 : index
    %c0_6 = arith.constant 0 : index
    %6 = vector.load %arg4[%c0_5, %c0_6] : memref<8x32xbf16, #tpu.memory_space<vmem>>, vector<8x32xbf16>
    %cst_7 = arith.constant dense<0.000000e+00> : vector<8x32xf32>
    %7 = tpu.matmul %3, %6, %cst_7 {dimension_numbers = #tpu.dot_dimension_numbers<[1], [0], [0], [1], [0, 0, 1, 1], [], []>} : vector<8x8xbf16>, vector<8x32xbf16>, vector<8x32xf32> -> vector<8x32xf32>
    %8 = arith.addf %5, %7 : vector<8x32xf32>
    %c0_8 = arith.constant 0 : index
    %c0_9 = arith.constant 0 : index
    %9 = vector.load %arg5[%c0_8, %c0_9] : memref<1x32xf32, #tpu.memory_space<vmem>>, vector<1x32xf32>
    %10 = vector.broadcast %9 : vector<1x32xf32> to vector<8x32xf32>
    %11 = arith.addf %8, %10 : vector<8x32xf32>
    %cst_10 = arith.constant 0.000000e+00 : f32
    %12 = vector.broadcast %cst_10 : f32 to vector<8x32xf32>
    %13 = arith.maximumf %11, %12 : vector<8x32xf32>
    %14 = arith.truncf %13 : vector<8x32xf32> to vector<8x32xbf16>
    %c0_11 = arith.constant 0 : index
    %c0_12 = arith.constant 0 : index
    %15 = vector.load %arg6[%c0_11, %c0_12] : memref<32x32xbf16, #tpu.memory_space<vmem>>, vector<32x32xbf16>
    %cst_13 = arith.constant dense<0.000000e+00> : vector<8x32xf32>
    %16 = tpu.matmul %14, %15, %cst_13 {dimension_numbers = #tpu.dot_dimension_numbers<[1], [0], [0], [1], [0, 0, 1, 1], [], []>} : vector<8x32xbf16>, vector<32x32xbf16>, vector<8x32xf32> -> vector<8x32xf32>
    %c0_14 = arith.constant 0 : index
    %c0_15 = arith.constant 0 : index
    %17 = vector.load %arg7[%c0_14, %c0_15] : memref<1x32xf32, #tpu.memory_space<vmem>>, vector<1x32xf32>
    %18 = vector.broadcast %17 : vector<1x32xf32> to vector<8x32xf32>
    %19 = arith.addf %16, %18 : vector<8x32xf32>
    %cst_16 = arith.constant 0.000000e+00 : f32
    %20 = vector.broadcast %cst_16 : f32 to vector<8x32xf32>
    %21 = arith.maximumf %19, %20 : vector<8x32xf32>
    %c0_17 = arith.constant 0 : index
    %c0_18 = arith.constant 0 : index
    %22 = vector.load %arg8[%c0_17, %c0_18] : memref<1x32xf32, #tpu.memory_space<vmem>>, vector<1x32xf32>
    %23 = vector.broadcast %22 : vector<1x32xf32> to vector<8x32xf32>
    %24 = arith.mulf %21, %23 : vector<8x32xf32>
    %cst_19 = arith.constant dense<0.000000e+00> : vector<8xf32>
    %25 = vector.multi_reduction <add>, %24, %cst_19 [1] : vector<8x32xf32> to vector<8xf32>
    %26 = vector.shape_cast %25 : vector<8xf32> to vector<8x1xf32>
    %c0_20 = arith.constant 0 : index
    %c0_21 = arith.constant 0 : index
    %27 = vector.load %arg9[%c0_20, %c0_21] : memref<1x1xf32, #tpu.memory_space<vmem>>, vector<1x1xf32>
    %28 = vector.broadcast %27 : vector<1x1xf32> to vector<8x1xf32>
    %29 = arith.addf %26, %28 : vector<8x1xf32>
    %c0_22 = arith.constant 0 : index
    %c0_23 = arith.constant 0 : index
    %30 = vector.load %arg10[%c0_22, %c0_23] : memref<8x1xf32, #tpu.memory_space<vmem>>, vector<8x1xf32>
    tpu.vector_store %arg10[%c0_22, %c0_23], %29 {strides = array<i32>} : memref<8x1xf32, #tpu.memory_space<vmem>>, vector<8x1xf32>,
    return
  }
  func.func @transform_0(%arg0: i32) -> (i32, i32) {
    %c0_i32 = arith.constant 0 : i32
    %c0_i32_0 = arith.constant 0 : i32
    return %arg0, %c0_i32 : i32, i32
  }
  func.func @transform_1(%arg0: i32) -> (i32, i32) {
    %c0_i32 = arith.constant 0 : i32
    %c0_i32_0 = arith.constant 0 : i32
    return %arg0, %c0_i32 : i32, i32
  }
  func.func @transform_2(%arg0: i32) -> (i32, i32) {
    %c0_i32 = arith.constant 0 : i32
    %c0_i32_0 = arith.constant 0 : i32
    %c0_i32_1 = arith.constant 0 : i32
    return %c0_i32, %c0_i32_0 : i32, i32
  }
  func.func @transform_3(%arg0: i32) -> (i32, i32) {
    %c0_i32 = arith.constant 0 : i32
    %c0_i32_0 = arith.constant 0 : i32
    %c0_i32_1 = arith.constant 0 : i32
    return %c0_i32, %c0_i32_0 : i32, i32
  }
  func.func @transform_4(%arg0: i32) -> (i32, i32) {
    %c0_i32 = arith.constant 0 : i32
    %c0_i32_0 = arith.constant 0 : i32
    %c0_i32_1 = arith.constant 0 : i32
    return %c0_i32, %c0_i32_0 : i32, i32
  }
  func.func @transform_5(%arg0: i32) -> (i32, i32) {
    %c0_i32 = arith.constant 0 : i32
    %c0_i32_0 = arith.constant 0 : i32
    %c0_i32_1 = arith.constant 0 : i32
    return %c0_i32, %c0_i32_0 : i32, i32
  }
  func.func @transform_6(%arg0: i32) -> (i32, i32) {
    %c0_i32 = arith.constant 0 : i32
    %c0_i32_0 = arith.constant 0 : i32
    %c0_i32_1 = arith.constant 0 : i32
    return %c0_i32, %c0_i32_0 : i32, i32
  }
  func.func @transform_7(%arg0: i32) -> (i32, i32) {
    %c0_i32 = arith.constant 0 : i32
    %c0_i32_0 = arith.constant 0 : i32
    %c0_i32_1 = arith.constant 0 : i32
    return %c0_i32, %c0_i32_0 : i32, i32
  }
  func.func @transform_8(%arg0: i32) -> (i32, i32) {
    %c0_i32 = arith.constant 0 : i32
    %c0_i32_0 = arith.constant 0 : i32
    %c0_i32_1 = arith.constant 0 : i32
    return %c0_i32, %c0_i32_0 : i32, i32
  }
  func.func @transform_9(%arg0: i32) -> (i32, i32) {
    %c0_i32 = arith.constant 0 : i32
    %c0_i32_0 = arith.constant 0 : i32
    return %arg0, %c0_i32 : i32, i32
  }
}

</mosaic_0001>

<bundles_post_ra>
// kernel: tpu_custom_call.1
= control target key start
LH: loop header
LB: loop body
LE: loop exit
PB: predicated region body
PF: predicated region fallthrough
CT: control target
= control target key end

     0   :  { %s428_s0 = inlined_call_operand.hbm [shape: f32[8,16], index: 0, kind: input, shape index: {}]   ;;  %s429_s1 = inlined_call_operand.hbm [shape: f32[8,8], index: 1, kind: input, shape index: {}]   ;;  %s430_s2 = inlined_call_operand.hbm [shape: bf16[16,32], index: 2, kind: input, shape index: {}]   ;;  %s431_s3 = inlined_call_operand.vmem [shape: bf16[8,32], index: 3, kind: input, shape index: {}]   ;;  %s432_s4 = inlined_call_operand.vmem [shape: f32[1,32], index: 4, kind: input, shape index: {}]   ;;  %s433_s5 = inlined_call_operand.hbm [shape: bf16[32,32], index: 5, kind: input, shape index: {}]   ;;  %s434_s6 = inlined_call_operand.vmem [shape: f32[1,32], index: 6, kind: input, shape index: {}]   ;;  %s435_s7 = inlined_call_operand.vmem [shape: f32[1,32], index: 7, kind: input, shape index: {}]   ;;  %s436_s8 = inlined_call_operand.<no memory space> [shape: f32[1,1], index: 8, kind: input, shape index: {}]   ;;  %s437_s9 = inlined_call_operand.vmem [shape: f32[8,1], index: 9, kind: output, shape index: {}]  }
   0x1   :  { %v14_v0 = vstv %s436_s8 }
   0x2   :  { %15 = vst [vmem:[#allocation2] sm:$0x1] %v14_v0 }
   0x3   :  { %16 = vsyncpa [#allocation4], 0 }
   0x4   :  { %17 = vsyncpa [#allocation6], 0  ;;  %s35_s13 = sshll.u32 %s429_s1, 4  ;;  %s36_s13 = int_to_ptr.hbm [resolvable:$true] %s35_s13 }
   0x5   :  { %18 = vsyncpa [#allocation9], 0  ;;  %s342_s14 = smov [#allocation5]   ;;  %s24_s18 = sshll.u32 %s428_s0, 4  ;;  %s25_s18 = int_to_ptr.hbm [resolvable:$true] %s24_s18 }
   0x6   :  { %s37_s15 = sshll.u32 %s342_s14, 4  ;;  %s343_s19 = smov [#allocation3]   ;;  %s38_s15 = int_to_ptr.vmem [resolvable:$true] %s37_s15 }
   0x7   :  { %40 = dma.hbm_to_vmem [thread:$0]  %s36_s13, 128, %s38_s15, [#allocation6]  }
   0x8   :  { %s26_s8 = sshll.u32 %s343_s19, 4  ;;  %s45_s22 = sshll.u32 %s430_s2, 4  ;;  %s27_s8 = int_to_ptr.vmem [resolvable:$true] %s26_s8  ;;  %s46_s22 = int_to_ptr.hbm [resolvable:$true] %s45_s22 }
   0x9   :  { %29 = dma.hbm_to_vmem [thread:$0]  %s25_s18, 128, %s27_s8, [#allocation4]  }
   0xa   :  { %s344_s1 = smov [#allocation7]   ;;  %s62_s26 = sshll.u32 %s433_s5, 4  ;;  %s63_s26 = int_to_ptr.hbm [resolvable:$true] %s62_s26 }
   0xb   :  { %s47_s23 = sshll.u32 %s344_s1, 4  ;;  %s345_s27 = smov 64   ;;  %s48_s23 = int_to_ptr.vmem [resolvable:$true] %s47_s23 }
   0xc   :  { %s346_s0 = smov 4   ;;  %s347_s28 = smov [#allocation8]  }
   0xd   :  { %53 = dma.hbm_to_vmem [thread:$0]  %s46_s22, 128, %s48_s23, [#allocation6], %s345_s27, %s345_s27, %s346_s0  }
   0xe   :  { %s64_s29 = sshll.u32 %s347_s28, 4  ;;  %s65_s29 = int_to_ptr.vmem [resolvable:$true] %s64_s29 }
   0xf   :  { %70 = dma.hbm_to_vmem [thread:$0]  %s63_s26, 256, %s65_s29, [#allocation9], %s345_s27, %s345_s27, %s346_s0  }
  0x10   :  { %336 = dma.done.wait [#allocation4], 128  }
  0x11   :  { %337 = vsyncadd [#allocation4], 4294967168 }
  0x12   :  { %338 = dma.done.wait [#allocation6], 256  }
  0x13   :  { %339 = vsyncadd [#allocation6], 4294967040 }
  0x14   :  { %340 = dma.done.wait [#allocation9], 256  }
  0x15   :  { %341 = vsyncadd [#allocation9], 4294967040  ;;  %vm105_vm0 = vcmask 1043456   ;;  %v100_v1 = vld [vmem:[%s431_s3] sm:$0xf]  ;;  %v227_v2 = vld [vmem:[#allocation7] sm:$0xff] }
  0x16   :  { %v96_v3 = vld [vmem:[#allocation5] sm:$0xff]  ;;  %v107_v4 = vsel %vm105_vm0, %v100_v1, 0  ;;  %v94_v6 = vld [vmem:[#allocation3] sm:$0xff]  ;;  %139 = vmatpush.bf16.msra.mxu1 %v227_v2  ;;  %vm101_vm1 = vcmask 64512   ;;  %vm128_vm2 = vcmask 130048   ;;  %v228_v9 = vld [vmem:[#allocation8] sm:$0xff] }
  0x17   :  { %v97_v5 = vpack.c.bf16 %v96_v3, %v96_v3  ;;  %116 = vmatpush.bf16.msra.mxu0 %v107_v4  ;;  %v95_v7 = vpack.c.bf16 %v94_v6, %v94_v6  ;;  %v229_v8 = vld [vmem:[#allocation8 + $0x8] sm:$0xff]  ;;  %v236_v10 = vld [vmem:[%s432_s4] ss:$0 sm:$0xff]  ;;  %vm172_vm3 = vcmask 261120   ;;  %vm203_vm4 = vcmask 7168  }
  0x18   :  { %182 = vmatpush.bf16.msra.mxu2 %v229_v8  ;;  %v237_v19 = vld [vmem:[%s434_s6] ss:$0 sm:$0xff] }
  0x19   :  { %217 = vmatmul.msk.bf16.vlgmr.msra.gmra.mxu1 %vm128_vm2, %v95_v7  ;;  %v238_v22 = vld [vmem:[%s435_s7] ss:$0 sm:$0xff] }
  0x1a   :  { %212 = vmatmul.msk.bf16.vlgmr.msra.gmra.mxu0 %vm101_vm1, %v97_v5  ;;  %v239_v27 = vld [vmem:[#allocation2] ss:$0 sm:$0xff] }
  0x1c   :  { %183 = vmatpush.bf16.msra.mxu2 %v228_v9 }
  0x96   :  { %v141_v12 = vpop.f32.mrf.mxu1 }
  0x97   :  { %v118_v11 = vpop.f32.mrf.mxu0 }
  0x98   :  { %v142_v13 = vadd.f32 %v141_v12, %v118_v11 }
  0x9a   :  { %v149_v14 = vadd.f32 %v236_v10, %v142_v13 }
  0x9c   :  { %v150_v15 = vmax.f32 %v149_v14, 0.0 }
  0x9e   :  { %v151_v16 = vpack.c.bf16 %v150_v15, %v150_v15  ;;  %v143_v18 = vpop.f32.mrf.mxu1 }
  0x9f   :  { %v120_v17 = vpop.f32.mrf.mxu0 }
  0xa0   :  { %226 = vmatmul.msk.bf16.vlgmr.msra.gmra.mxu2 %vm172_vm3, %v151_v16 }
 0x123   :  { %v185_v20 = vpop.f32.mrf.mxu2 }
 0x124   :  { %v186_v21 = vadd.f32 %v237_v19, %v185_v20 }
 0x126   :  { %v189_v23 = vmax.f32 %v186_v21, 0.0 }
 0x128   :  { %v194_v24 = vmul.f32 %v238_v22, %v189_v23 }
 0x12a   :  { %v195_v25 = vsel %vm172_vm3, %v194_v24, 0.0 }
 0x12b   :  { %v187_v26 = vpop.f32.mrf.mxu2  ;;  %196 = vadd.xlane.f32.xlu0 %v195_v25 }
 0x19e   :  { %v197_v28 = vpop.xlane.xlu0 %196 }
 0x19f   :  { %v202_v29 = vadd.f32 %v239_v27, %v197_v28 }
 0x1a1   :  { %204 = vst.msk [vmem:[%s437_s9] sm:$0xff] %vm203_vm4, %v202_v29 }
 0x1a2   :  { %209 = vsyncpa [#allocation4], 1 }
 0x1a3   :  { %210 = vsyncpa [#allocation6], 1 }
 0x1a4   :  { %211 = vsyncpa [#allocation9], 1 }

</bundles_post_ra>
